<compile_context>
chip_gen: v7x
topology: tpu7x:2x2x1
jax: 0.10.0
libtpu: 0.0.40
codegen_flags: <defaults>
</compile_context>

<pallas_src>
import functools

import jax
import jax.numpy as jnp
import numpy as np
from jax.experimental import pallas as pl
from jax.experimental.pallas import tpu as pltpu

_C1 = 0.01 ** 2
_C2 = 0.03 ** 2


def _round_up(x, m):
    return ((x + m - 1) // m) * m


def _adv_loss_kernel(img_ref, src_ref, tki_ref, tkt_ref, out_ref,
                     sx, sy, sxx, syy, sxy, ssim_acc,
                     *, lamb, budget, n_rows, n_cols, row_tile, col_tile):
    i = pl.program_id(0)          # row-tile index
    j = pl.program_id(1)          # col-tile index (reduction axis, innermost)
    ni = pl.num_programs(0)
    nj = pl.num_programs(1)

    # ---- init global SSIM accumulator on the very first grid step ----------
    @pl.when(jnp.logical_and(i == 0, j == 0))
    def _init_global():
        ssim_acc[...] = jnp.zeros_like(ssim_acc)

    # ---- single-pass streaming moments over this (row_tile, col_tile) tile -
    # Lane-aligned 128-wide chunks keep the accumulation on the VPU
    # (elementwise adds of identically laid-out vregs); the cross-lane XLU
    # reduce happens only once per row-tile in the finalize branch below.
    n_chunks = col_tile // 128
    xc = img_ref[:, 0:128].astype(jnp.float32)   # cast right after load
    yc = src_ref[:, 0:128].astype(jnp.float32)
    px, py = xc, yc
    pxx, pyy, pxy = xc * xc, yc * yc, xc * yc
    for c in range(1, n_chunks):
        lo = c * 128
        xc = img_ref[:, lo:lo + 128].astype(jnp.float32)
        yc = src_ref[:, lo:lo + 128].astype(jnp.float32)
        px = px + xc
        py = py + yc
        pxx = pxx + xc * xc
        pyy = pyy + yc * yc
        pxy = pxy + xc * yc

    # First column tile of each row-tile assigns (no zero-init memset + add);
    # subsequent column tiles accumulate.
    @pl.when(j == 0)
    def _assign_row_stats():
        sx[...] = px
        sy[...] = py
        sxx[...] = pxx
        syy[...] = pyy
        sxy[...] = pxy

    @pl.when(j != 0)
    def _accum_row_stats():
        sx[...] += px
        sy[...] += py
        sxx[...] += pxx
        syy[...] += pyy
        sxy[...] += pxy

    # ---- per-row-tile finalize: derive SSIM from streamed moments ----------
    @pl.when(j == nj - 1)
    def _finish_rows():
        inv_n = 1.0 / n_cols                        # hoisted constant
        mx = jnp.sum(sx[...], axis=-1, keepdims=True) * inv_n
        my = jnp.sum(sy[...], axis=-1, keepdims=True) * inv_n
        exx = jnp.sum(sxx[...], axis=-1, keepdims=True) * inv_n
        eyy = jnp.sum(syy[...], axis=-1, keepdims=True) * inv_n
        exy = jnp.sum(sxy[...], axis=-1, keepdims=True) * inv_n
        vx = exx - mx * mx
        vy = eyy - my * my
        cxy = exy - mx * my
        ssim = ((2.0 * mx * my + _C1) * (2.0 * cxy + _C2)) / (
            (mx * mx + my * my + _C1) * (vx + vy + _C2))
        # mask rows that are zero-padding (beyond the real B*C rows)
        row_ids = i * row_tile + jax.lax.broadcasted_iota(
            jnp.int32, (row_tile, 1), 0)
        ssim = jnp.where(row_ids < n_rows, ssim, jnp.zeros_like(ssim))
        ssim_acc[...] += jnp.sum(ssim, axis=0, keepdims=True)

    # ---- global finalize on the very last grid step --------------------------
    @pl.when(jnp.logical_and(i == ni - 1, j == nj - 1))
    def _finalize():
        # term_internal = ||tk_img - tk_target||_2
        d = tki_ref[...].astype(jnp.float32) - tkt_ref[...].astype(jnp.float32)
        term_internal = jnp.sqrt(jnp.sum(d * d))
        dssim = 0.5 * (1.0 - ssim_acc[...] * (1.0 / n_rows))    # (1,1)
        tp = dssim - budget
        tp = jnp.where(tp > 0.0, tp * tp, jnp.zeros_like(tp))   # hinge-squared
        out_ref[...] = jnp.reshape(term_internal, (1, 1)) + lamb * tp


def adversarial_loss(img, source, tk_img, tk_target, lamb=1.0, budget=0.3,
                     row_tile=None, col_tile=None,
                     vmem_limit_bytes=32 * 1024 * 1024):
    """img, source: [B, C, H, W]; tk_img, tk_target: [B, D]. Returns scalar."""
    B, C, H, W = img.shape
    assert source.shape == img.shape
    R, N = B * C, H * W

    # Native dtype on the wire (no wrapper-side f32 upcast); the kernel casts
    # per 128-lane chunk and accumulates in f32.
    img2d = img.reshape(R, N)
    src2d = source.reshape(R, N)

    # Tile selection: respect the (8, 128) constraint; row_tile=32 keeps the
    # five (row_tile, 128) f32 partials within register budget, col_tile up to
    # 4096 keeps DMA tiles >= ~512 KiB for HBM bandwidth while leaving ample
    # headroom in VMEM (v7x has 64 MiB per TC).
    if col_tile is None:
        col_tile = min(_round_up(N, 128), 4096)
    else:
        col_tile = _round_up(col_tile, 128)
    if row_tile is None:
        row_tile = min(_round_up(R, 8), 32)
    else:
        row_tile = _round_up(row_tile, 8)

    Rp = _round_up(R, row_tile)
    Np = _round_up(N, col_tile)
    if (Rp, Np) != (R, N):
        # Zero padding is exact: padded cols contribute 0 to every moment sum
        # (means use 1/N of the real width) and padded rows are masked out of
        # the SSIM mean inside the kernel.
        img2d = jnp.pad(img2d, ((0, Rp - R), (0, Np - N)))
        src2d = jnp.pad(src2d, ((0, Rp - R), (0, Np - N)))

    grid = (Rp // row_tile, Np // col_tile)

    kernel = functools.partial(
        _adv_loss_kernel,
        lamb=float(lamb), budget=float(budget),
        n_rows=R, n_cols=N, row_tile=row_tile, col_tile=col_tile)

    out = pl.pallas_call(
        kernel,
        out_shape=jax.ShapeDtypeStruct((1, 1), jnp.float32),
        grid_spec=pltpu.PrefetchScalarGridSpec(
            num_scalar_prefetch=0,
            grid=grid,
            in_specs=[
                pl.BlockSpec((row_tile, col_tile), lambda i, j: (i, j)),
                pl.BlockSpec((row_tile, col_tile), lambda i, j: (i, j)),
                # tk blocks equal the full arrays (legal even when B % 8 != 0);
                # block index never changes -> DMA'd once, resident after.
                pl.BlockSpec(tk_img.shape, lambda i, j: (0, 0)),
                pl.BlockSpec(tk_target.shape, lambda i, j: (0, 0)),
            ],
            out_specs=pl.BlockSpec((1, 1), lambda i, j: (0, 0)),
            scratch_shapes=[
                pltpu.VMEM((row_tile, 128), jnp.float32),  # sum x
                pltpu.VMEM((row_tile, 128), jnp.float32),  # sum y
                pltpu.VMEM((row_tile, 128), jnp.float32),  # sum x*x
                pltpu.VMEM((row_tile, 128), jnp.float32),  # sum y*y
                pltpu.VMEM((row_tile, 128), jnp.float32),  # sum x*y
                pltpu.VMEM((1, 1), jnp.float32),           # SSIM row-sum acc
            ]),
        compiler_params=pltpu.CompilerParams(
            dimension_semantics=("arbitrary", "arbitrary"),
            vmem_limit_bytes=vmem_limit_bytes),
    )(img2d, src2d, tk_img, tk_target)
    return out[0, 0]


def _reference(img, source, tk_img, tk_target, lamb=1.0, budget=0.3):
    tki = tk_img.astype(jnp.float32)
    tkt = tk_target.astype(jnp.float32)
    term_internal = jnp.sqrt(jnp.sum((tki - tkt) ** 2))
    B, C, H, W = img.shape
    x = img.reshape(B * C, H * W).astype(jnp.float32)
    y = source.reshape(B * C, H * W).astype(jnp.float32)
    mx = x.mean(-1, keepdims=True)
    my = y.mean(-1, keepdims=True)
    vx = ((x - mx) ** 2).mean(-1, keepdims=True)
    vy = ((y - my) ** 2).mean(-1, keepdims=True)
    cxy = ((x - mx) * (y - my)).mean(-1, keepdims=True)
    ssim = ((2 * mx * my + _C1) * (2 * cxy + _C2)) / (
        (mx * mx + my * my + _C1) * (vx + vy + _C2))
    dssim = 0.5 * (1.0 - ssim.mean())
    tp = dssim - budget
    tp = jnp.where(tp > 0, tp ** 2, 0.0)
    return term_internal + lamb * tp


if __name__ == "__main__":
    key = jax.random.PRNGKey(0)
    k_img, k_src, k_tki, k_tkt = jax.random.split(key, 4)

    # B*C = 12 rows -> 2 row-tiles of 8 (exercises row masking and the
    # cross-row-tile SSIM accumulation); H*W = 1536 with col_tile=512 -> 3
    # column reduction steps (exercises the pipelined streaming accumulation).
    B, C, H, W, D = 4, 3, 32, 48, 128
    img = jax.random.uniform(k_img, (B, C, H, W), dtype=jnp.float32)
    source = jax.random.uniform(k_src, (B, C, H, W), dtype=jnp.float32)
    # tk_target stands in for the hooked model activation computed in
    # __init__ (get_internal_representation); initialized deterministically.
    tk_img = jax.random.normal(k_tki, (B, D), dtype=jnp.float32)
    tk_target = jax.random.normal(k_tkt, (B, D), dtype=jnp.float32)

    out = adversarial_loss(img, source, tk_img, tk_target,
                           lamb=1.0, budget=0.3, row_tile=8, col_tile=512)
    out = jax.block_until_ready(out)

    ref = _reference(img, source, tk_img, tk_target, lamb=1.0, budget=0.3)
    np.testing.assert_allclose(np.asarray(out), np.asarray(ref),
                               rtol=1e-5, atol=1e-5)

    # Also exercise the default (auto) tile path once.
    out2 = jax.block_until_ready(
        adversarial_loss(img, source, tk_img, tk_target, lamb=1.0, budget=0.3))
    np.testing.assert_allclose(np.asarray(out2), np.asarray(ref),
                               rtol=1e-5, atol=1e-5)
    print("KERNEL_OK")
</pallas_src>

<mosaic_0001>
module attributes {stable_mosaic.version = 11 : i64} {
  func.func @_adv_loss_kernel(%arg0: i32, %arg1: i32, %arg2: memref<8x512xf32, #tpu.memory_space<vmem>>, %arg3: memref<8x512xf32, #tpu.memory_space<vmem>>, %arg4: memref<4x128xf32, #tpu.memory_space<vmem>>, %arg5: memref<4x128xf32, #tpu.memory_space<vmem>>, %arg6: memref<1x1xf32, #tpu.memory_space<vmem>>, %arg7: memref<8x128xf32, #tpu.memory_space<vmem>>, %arg8: memref<8x128xf32, #tpu.memory_space<vmem>>, %arg9: memref<8x128xf32, #tpu.memory_space<vmem>>, %arg10: memref<8x128xf32, #tpu.memory_space<vmem>>, %arg11: memref<8x128xf32, #tpu.memory_space<vmem>>, %arg12: memref<1x1xf32, #tpu.memory_space<vmem>>) attributes {dimension_semantics = [#tpu.dimension_semantics<arbitrary>, #tpu.dimension_semantics<arbitrary>], iteration_bounds = array<i64: 2, 3>, scalar_prefetch = 0 : i64, scratch_operands = 6 : i64, tpu.core_type = #tpu.core_type<tc>, window_params = [{transform_indices = @transform_0, window_bounds = array<i64: 8, 512>}, {transform_indices = @transform_1, window_bounds = array<i64: 8, 512>}, {pipeline_mode = #tpu.pipeline_mode<synchronous>, transform_indices = @transform_2, window_bounds = array<i64: 4, 128>}, {pipeline_mode = #tpu.pipeline_mode<synchronous>, transform_indices = @transform_3, window_bounds = array<i64: 4, 128>}, {pipeline_mode = #tpu.pipeline_mode<synchronous>, transform_indices = @transform_4, window_bounds = array<i64: 1, 1>}]} {
    %c0_i32 = arith.constant 0 : i32
    %0 = arith.cmpi eq, %arg0, %c0_i32 : i32
    %c0_i32_0 = arith.constant 0 : i32
    %1 = arith.cmpi eq, %arg1, %c0_i32_0 : i32
    %2 = arith.andi %0, %1 : i1
    %3 = arith.extui %2 : i1 to i32
    %c0_i32_1 = arith.constant 0 : i32
    %4 = arith.cmpi ne, %3, %c0_i32_1 : i32
    scf.if %4 {
      %cst = arith.constant 0.000000e+00 : f32
      %54 = vector.broadcast %cst : f32 to vector<1x1xf32>
      %c0_21 = arith.constant 0 : index
      %c0_22 = arith.constant 0 : index
      %55 = vector.load %arg12[%c0_21, %c0_22] : memref<1x1xf32, #tpu.memory_space<vmem>>, vector<1x1xf32>
      tpu.vector_store %arg12[%c0_21, %c0_22], %54 {strides = array<i32>} : memref<1x1xf32, #tpu.memory_space<vmem>>, vector<1x1xf32>,
    } else {
    }
    %c0 = arith.constant 0 : index
    %c0_2 = arith.constant 0 : index
    %5 = vector.load %arg2[%c0, %c0_2] : memref<8x512xf32, #tpu.memory_space<vmem>>, vector<8x128xf32>
    %c0_3 = arith.constant 0 : index
    %c0_4 = arith.constant 0 : index
    %6 = vector.load %arg3[%c0_3, %c0_4] : memref<8x512xf32, #tpu.memory_space<vmem>>, vector<8x128xf32>
    %7 = arith.mulf %5, %5 : vector<8x128xf32>
    %8 = arith.mulf %6, %6 : vector<8x128xf32>
    %9 = arith.mulf %5, %6 : vector<8x128xf32>
    %c0_5 = arith.constant 0 : index
    %c128 = arith.constant 128 : index
    %10 = vector.load %arg2[%c0_5, %c128] : memref<8x512xf32, #tpu.memory_space<vmem>>, vector<8x128xf32>
    %c0_6 = arith.constant 0 : index
    %c128_7 = arith.constant 128 : index
    %11 = vector.load %arg3[%c0_6, %c128_7] : memref<8x512xf32, #tpu.memory_space<vmem>>, vector<8x128xf32>
    %12 = arith.addf %5, %10 : vector<8x128xf32>
    %13 = arith.addf %6, %11 : vector<8x128xf32>
    %14 = arith.mulf %10, %10 : vector<8x128xf32>
    %15 = arith.addf %7, %14 : vector<8x128xf32>
    %16 = arith.mulf %11, %11 : vector<8x128xf32>
    %17 = arith.addf %8, %16 : vector<8x128xf32>
    %18 = arith.mulf %10, %11 : vector<8x128xf32>
    %19 = arith.addf %9, %18 : vector<8x128xf32>
    %c0_8 = arith.constant 0 : index
    %c256 = arith.constant 256 : index
    %20 = vector.load %arg2[%c0_8, %c256] : memref<8x512xf32, #tpu.memory_space<vmem>>, vector<8x128xf32>
    %c0_9 = arith.constant 0 : index
    %c256_10 = arith.constant 256 : index
    %21 = vector.load %arg3[%c0_9, %c256_10] : memref<8x512xf32, #tpu.memory_space<vmem>>, vector<8x128xf32>
    %22 = arith.addf %12, %20 : vector<8x128xf32>
    %23 = arith.addf %13, %21 : vector<8x128xf32>
    %24 = arith.mulf %20, %20 : vector<8x128xf32>
    %25 = arith.addf %15, %24 : vector<8x128xf32>
    %26 = arith.mulf %21, %21 : vector<8x128xf32>
    %27 = arith.addf %17, %26 : vector<8x128xf32>
    %28 = arith.mulf %20, %21 : vector<8x128xf32>
    %29 = arith.addf %19, %28 : vector<8x128xf32>
    %c0_11 = arith.constant 0 : index
    %c384 = arith.constant 384 : index
    %30 = vector.load %arg2[%c0_11, %c384] : memref<8x512xf32, #tpu.memory_space<vmem>>, vector<8x128xf32>
    %c0_12 = arith.constant 0 : index
    %c384_13 = arith.constant 384 : index
    %31 = vector.load %arg3[%c0_12, %c384_13] : memref<8x512xf32, #tpu.memory_space<vmem>>, vector<8x128xf32>
    %32 = arith.addf %22, %30 : vector<8x128xf32>
    %33 = arith.addf %23, %31 : vector<8x128xf32>
    %34 = arith.mulf %30, %30 : vector<8x128xf32>
    %35 = arith.addf %25, %34 : vector<8x128xf32>
    %36 = arith.mulf %31, %31 : vector<8x128xf32>
    %37 = arith.addf %27, %36 : vector<8x128xf32>
    %38 = arith.mulf %30, %31 : vector<8x128xf32>
    %39 = arith.addf %29, %38 : vector<8x128xf32>
    %c0_i32_14 = arith.constant 0 : i32
    %40 = arith.cmpi eq, %arg1, %c0_i32_14 : i32
    %41 = arith.extui %40 : i1 to i32
    %c0_i32_15 = arith.constant 0 : i32
    %42 = arith.cmpi ne, %41, %c0_i32_15 : i32
    scf.if %42 {
      %c0_21 = arith.constant 0 : index
      %c0_22 = arith.constant 0 : index
      %54 = vector.load %arg7[%c0_21, %c0_22] : memref<8x128xf32, #tpu.memory_space<vmem>>, vector<8x128xf32>
      tpu.vector_store %arg7[%c0_21, %c0_22], %32 {strides = array<i32>} : memref<8x128xf32, #tpu.memory_space<vmem>>, vector<8x128xf32>,
      %c0_23 = arith.constant 0 : index
      %c0_24 = arith.constant 0 : index
      %55 = vector.load %arg8[%c0_23, %c0_24] : memref<8x128xf32, #tpu.memory_space<vmem>>, vector<8x128xf32>
      tpu.vector_store %arg8[%c0_23, %c0_24], %33 {strides = array<i32>} : memref<8x128xf32, #tpu.memory_space<vmem>>, vector<8x128xf32>,
      %c0_25 = arith.constant 0 : index
      %c0_26 = arith.constant 0 : index
      %56 = vector.load %arg9[%c0_25, %c0_26] : memref<8x128xf32, #tpu.memory_space<vmem>>, vector<8x128xf32>
      tpu.vector_store %arg9[%c0_25, %c0_26], %35 {strides = array<i32>} : memref<8x128xf32, #tpu.memory_space<vmem>>, vector<8x128xf32>,
      %c0_27 = arith.constant 0 : index
      %c0_28 = arith.constant 0 : index
      %57 = vector.load %arg10[%c0_27, %c0_28] : memref<8x128xf32, #tpu.memory_space<vmem>>, vector<8x128xf32>
      tpu.vector_store %arg10[%c0_27, %c0_28], %37 {strides = array<i32>} : memref<8x128xf32, #tpu.memory_space<vmem>>, vector<8x128xf32>,
      %c0_29 = arith.constant 0 : index
      %c0_30 = arith.constant 0 : index
      %58 = vector.load %arg11[%c0_29, %c0_30] : memref<8x128xf32, #tpu.memory_space<vmem>>, vector<8x128xf32>
      tpu.vector_store %arg11[%c0_29, %c0_30], %39 {strides = array<i32>} : memref<8x128xf32, #tpu.memory_space<vmem>>, vector<8x128xf32>,
    } else {
    }
    %c0_i32_16 = arith.constant 0 : i32
    %43 = arith.cmpi ne, %arg1, %c0_i32_16 : i32
    %44 = arith.extui %43 : i1 to i32
    %c0_i32_17 = arith.constant 0 : i32
    %45 = arith.cmpi ne, %44, %c0_i32_17 : i32
    scf.if %45 {
      %c0_21 = arith.constant 0 : index
      %c0_22 = arith.constant 0 : index
      %54 = vector.load %arg7[%c0_21, %c0_22] : memref<8x128xf32, #tpu.memory_space<vmem>>, vector<8x128xf32>
      %55 = arith.addf %54, %32 : vector<8x128xf32>
      %c0_23 = arith.constant 0 : index
      %c0_24 = arith.constant 0 : index
      %56 = vector.load %arg7[%c0_23, %c0_24] : memref<8x128xf32, #tpu.memory_space<vmem>>, vector<8x128xf32>
      tpu.vector_store %arg7[%c0_23, %c0_24], %55 {strides = array<i32>} : memref<8x128xf32, #tpu.memory_space<vmem>>, vector<8x128xf32>,
      %c0_25 = arith.constant 0 : index
      %c0_26 = arith.constant 0 : index
      %57 = vector.load %arg8[%c0_25, %c0_26] : memref<8x128xf32, #tpu.memory_space<vmem>>, vector<8x128xf32>
      %58 = arith.addf %57, %33 : vector<8x128xf32>
      %c0_27 = arith.constant 0 : index
      %c0_28 = arith.constant 0 : index
      %59 = vector.load %arg8[%c0_27, %c0_28] : memref<8x128xf32, #tpu.memory_space<vmem>>, vector<8x128xf32>
      tpu.vector_store %arg8[%c0_27, %c0_28], %58 {strides = array<i32>} : memref<8x128xf32, #tpu.memory_space<vmem>>, vector<8x128xf32>,
      %c0_29 = arith.constant 0 : index
      %c0_30 = arith.constant 0 : index
      %60 = vector.load %arg9[%c0_29, %c0_30] : memref<8x128xf32, #tpu.memory_space<vmem>>, vector<8x128xf32>
      %61 = arith.addf %60, %35 : vector<8x128xf32>
      %c0_31 = arith.constant 0 : index
      %c0_32 = arith.constant 0 : index
      %62 = vector.load %arg9[%c0_31, %c0_32] : memref<8x128xf32, #tpu.memory_space<vmem>>, vector<8x128xf32>
      tpu.vector_store %arg9[%c0_31, %c0_32], %61 {strides = array<i32>} : memref<8x128xf32, #tpu.memory_space<vmem>>, vector<8x128xf32>,
      %c0_33 = arith.constant 0 : index
      %c0_34 = arith.constant 0 : index
      %63 = vector.load %arg10[%c0_33, %c0_34] : memref<8x128xf32, #tpu.memory_space<vmem>>, vector<8x128xf32>
      %64 = arith.addf %63, %37 : vector<8x128xf32>
      %c0_35 = arith.constant 0 : index
      %c0_36 = arith.constant 0 : index
      %65 = vector.load %arg10[%c0_35, %c0_36] : memref<8x128xf32, #tpu.memory_space<vmem>>, vector<8x128xf32>
      tpu.vector_store %arg10[%c0_35, %c0_36], %64 {strides = array<i32>} : memref<8x128xf32, #tpu.memory_space<vmem>>, vector<8x128xf32>,
      %c0_37 = arith.constant 0 : index
      %c0_38 = arith.constant 0 : index
      %66 = vector.load %arg11[%c0_37, %c0_38] : memref<8x128xf32, #tpu.memory_space<vmem>>, vector<8x128xf32>
      %67 = arith.addf %66, %39 : vector<8x128xf32>
      %c0_39 = arith.constant 0 : index
      %c0_40 = arith.constant 0 : index
      %68 = vector.load %arg11[%c0_39, %c0_40] : memref<8x128xf32, #tpu.memory_space<vmem>>, vector<8x128xf32>
      tpu.vector_store %arg11[%c0_39, %c0_40], %67 {strides = array<i32>} : memref<8x128xf32, #tpu.memory_space<vmem>>, vector<8x128xf32>,
    } else {
    }
    %c2_i32 = arith.constant 2 : i32
    %46 = arith.cmpi eq, %arg1, %c2_i32 : i32
    %47 = arith.extui %46 : i1 to i32
    %c0_i32_18 = arith.constant 0 : i32
    %48 = arith.cmpi ne, %47, %c0_i32_18 : i32
    scf.if %48 {
      %c0_21 = arith.constant 0 : index
      %c0_22 = arith.constant 0 : index
      %54 = vector.load %arg7[%c0_21, %c0_22] : memref<8x128xf32, #tpu.memory_space<vmem>>, vector<8x128xf32>
      %cst = arith.constant dense<0.000000e+00> : vector<8xf32>
      %55 = vector.multi_reduction <add>, %54, %cst [1] : vector<8x128xf32> to vector<8xf32>
      %56 = vector.shape_cast %55 : vector<8xf32> to vector<8x1xf32>
      %cst_23 = arith.constant 6.51041686E-4 : f32
      %57 = vector.broadcast %cst_23 : f32 to vector<8x1xf32>
      %58 = arith.mulf %56, %57 : vector<8x1xf32>
      %c0_24 = arith.constant 0 : index
      %c0_25 = arith.constant 0 : index
      %59 = vector.load %arg8[%c0_24, %c0_25] : memref<8x128xf32, #tpu.memory_space<vmem>>, vector<8x128xf32>
      %cst_26 = arith.constant dense<0.000000e+00> : vector<8xf32>
      %60 = vector.multi_reduction <add>, %59, %cst_26 [1] : vector<8x128xf32> to vector<8xf32>
      %61 = vector.shape_cast %60 : vector<8xf32> to vector<8x1xf32>
      %cst_27 = arith.constant 6.51041686E-4 : f32
      %62 = vector.broadcast %cst_27 : f32 to vector<8x1xf32>
      %63 = arith.mulf %61, %62 : vector<8x1xf32>
      %c0_28 = arith.constant 0 : index
      %c0_29 = arith.constant 0 : index
      %64 = vector.load %arg9[%c0_28, %c0_29] : memref<8x128xf32, #tpu.memory_space<vmem>>, vector<8x128xf32>
      %cst_30 = arith.constant dense<0.000000e+00> : vector<8xf32>
      %65 = vector.multi_reduction <add>, %64, %cst_30 [1] : vector<8x128xf32> to vector<8xf32>
      %66 = vector.shape_cast %65 : vector<8xf32> to vector<8x1xf32>
      %cst_31 = arith.constant 6.51041686E-4 : f32
      %67 = vector.broadcast %cst_31 : f32 to vector<8x1xf32>
      %68 = arith.mulf %66, %67 : vector<8x1xf32>
      %c0_32 = arith.constant 0 : index
      %c0_33 = arith.constant 0 : index
      %69 = vector.load %arg10[%c0_32, %c0_33] : memref<8x128xf32, #tpu.memory_space<vmem>>, vector<8x128xf32>
      %cst_34 = arith.constant dense<0.000000e+00> : vector<8xf32>
      %70 = vector.multi_reduction <add>, %69, %cst_34 [1] : vector<8x128xf32> to vector<8xf32>
      %71 = vector.shape_cast %70 : vector<8xf32> to vector<8x1xf32>
      %cst_35 = arith.constant 6.51041686E-4 : f32
      %72 = vector.broadcast %cst_35 : f32 to vector<8x1xf32>
      %73 = arith.mulf %71, %72 : vector<8x1xf32>
      %c0_36 = arith.constant 0 : index
      %c0_37 = arith.constant 0 : index
      %74 = vector.load %arg11[%c0_36, %c0_37] : memref<8x128xf32, #tpu.memory_space<vmem>>, vector<8x128xf32>
      %cst_38 = arith.constant dense<0.000000e+00> : vector<8xf32>
      %75 = vector.multi_reduction <add>, %74, %cst_38 [1] : vector<8x128xf32> to vector<8xf32>
      %76 = vector.shape_cast %75 : vector<8xf32> to vector<8x1xf32>
      %cst_39 = arith.constant 6.51041686E-4 : f32
      %77 = vector.broadcast %cst_39 : f32 to vector<8x1xf32>
      %78 = arith.mulf %76, %77 : vector<8x1xf32>
      %79 = arith.mulf %58, %58 : vector<8x1xf32>
      %80 = arith.subf %68, %79 : vector<8x1xf32>
      %81 = arith.mulf %63, %63 : vector<8x1xf32>
      %82 = arith.subf %73, %81 : vector<8x1xf32>
      %83 = arith.mulf %58, %63 : vector<8x1xf32>
      %84 = arith.subf %78, %83 : vector<8x1xf32>
      %cst_40 = arith.constant 2.000000e+00 : f32
      %85 = vector.broadcast %cst_40 : f32 to vector<8x1xf32>
      %86 = arith.mulf %85, %58 : vector<8x1xf32>
      %87 = arith.mulf %86, %63 : vector<8x1xf32>
      %cst_41 = arith.constant 9.99999974E-5 : f32
      %88 = vector.broadcast %cst_41 : f32 to vector<8x1xf32>
      %89 = arith.addf %87, %88 : vector<8x1xf32>
      %cst_42 = arith.constant 2.000000e+00 : f32
      %90 = vector.broadcast %cst_42 : f32 to vector<8x1xf32>
      %91 = arith.mulf %90, %84 : vector<8x1xf32>
      %cst_43 = arith.constant 8.99999984E-4 : f32
      %92 = vector.broadcast %cst_43 : f32 to vector<8x1xf32>
      %93 = arith.addf %91, %92 : vector<8x1xf32>
      %94 = arith.mulf %89, %93 : vector<8x1xf32>
      %95 = arith.mulf %58, %58 : vector<8x1xf32>
      %96 = arith.mulf %63, %63 : vector<8x1xf32>
      %97 = arith.addf %95, %96 : vector<8x1xf32>
      %cst_44 = arith.constant 9.99999974E-5 : f32
      %98 = vector.broadcast %cst_44 : f32 to vector<8x1xf32>
      %99 = arith.addf %97, %98 : vector<8x1xf32>
      %100 = arith.addf %80, %82 : vector<8x1xf32>
      %cst_45 = arith.constant 8.99999984E-4 : f32
      %101 = vector.broadcast %cst_45 : f32 to vector<8x1xf32>
      %102 = arith.addf %100, %101 : vector<8x1xf32>
      %103 = arith.mulf %99, %102 : vector<8x1xf32>
      %104 = arith.divf %94, %103 : vector<8x1xf32>
      %c8_i32 = arith.constant 8 : i32
      %105 = arith.muli %arg0, %c8_i32 : i32
      %106 = tpu.iota {dimensions = array<i32: 0>} : vector<8x1xi32>
      %107 = vector.broadcast %105 : i32 to vector<8x1xi32>
      %108 = arith.addi %107, %106 : vector<8x1xi32>
      %c12_i32 = arith.constant 12 : i32
      %109 = vector.broadcast %c12_i32 : i32 to vector<8x1xi32>
      %110 = arith.cmpi slt, %108, %109 : vector<8x1xi32>
      %cst_46 = arith.constant 0.000000e+00 : f32
      %111 = vector.broadcast %cst_46 : f32 to vector<8x1xf32>
      %112 = arith.select %110, %104, %111 : vector<8x1xi1>, vector<8x1xf32>
      %c0_47 = arith.constant 0 : index
      %c0_48 = arith.constant 0 : index
      %113 = vector.load %arg12[%c0_47, %c0_48] : memref<1x1xf32, #tpu.memory_space<vmem>>, vector<1x1xf32>
      %cst_49 = arith.constant dense<0.000000e+00> : vector<1xf32>
      %114 = vector.multi_reduction <add>, %112, %cst_49 [0] : vector<8x1xf32> to vector<1xf32>
      %115 = vector.shape_cast %114 : vector<1xf32> to vector<1x1xf32>
      %116 = arith.addf %113, %115 : vector<1x1xf32>
      %c0_50 = arith.constant 0 : index
      %c0_51 = arith.constant 0 : index
      %117 = vector.load %arg12[%c0_50, %c0_51] : memref<1x1xf32, #tpu.memory_space<vmem>>, vector<1x1xf32>
      tpu.vector_store %arg12[%c0_50, %c0_51], %116 {strides = array<i32>} : memref<1x1xf32, #tpu.memory_space<vmem>>, vector<1x1xf32>,
    } else {
    }
    %c1_i32 = arith.constant 1 : i32
    %49 = arith.cmpi eq, %arg0, %c1_i32 : i32
    %c2_i32_19 = arith.constant 2 : i32
    %50 = arith.cmpi eq, %arg1, %c2_i32_19 : i32
    %51 = arith.andi %49, %50 : i1
    %52 = arith.extui %51 : i1 to i32
    %c0_i32_20 = arith.constant 0 : i32
    %53 = arith.cmpi ne, %52, %c0_i32_20 : i32
    scf.if %53 {
      %c0_21 = arith.constant 0 : index
      %c0_22 = arith.constant 0 : index
      %54 = vector.load %arg4[%c0_21, %c0_22] : memref<4x128xf32, #tpu.memory_space<vmem>>, vector<4x128xf32>
      %c0_23 = arith.constant 0 : index
      %c0_24 = arith.constant 0 : index
      %55 = vector.load %arg5[%c0_23, %c0_24] : memref<4x128xf32, #tpu.memory_space<vmem>>, vector<4x128xf32>
      %56 = arith.subf %54, %55 : vector<4x128xf32>
      %57 = arith.mulf %56, %56 : vector<4x128xf32>
      %58 = vector.shape_cast %57 : vector<4x128xf32> to vector<1x4x128xf32>
      %cst = arith.constant dense<0.000000e+00> : vector<1xf32>
      %59 = vector.multi_reduction <add>, %58, %cst [1, 2] : vector<1x4x128xf32> to vector<1xf32>
      %60 = vector.shape_cast %59 : vector<1xf32> to vector<1x1x1xf32>
      %61 = vector.extract %60[0, 0, 0] : f32 from vector<1x1x1xf32>
      %62 = math.sqrt %61 : f32
      %c0_25 = arith.constant 0 : index
      %c0_26 = arith.constant 0 : index
      %63 = vector.load %arg12[%c0_25, %c0_26] : memref<1x1xf32, #tpu.memory_space<vmem>>, vector<1x1xf32>
      %cst_27 = arith.constant 0.0833333358 : f32
      %64 = vector.broadcast %cst_27 : f32 to vector<1x1xf32>
      %65 = arith.mulf %63, %64 : vector<1x1xf32>
      %cst_28 = arith.constant 1.000000e+00 : f32
      %66 = vector.broadcast %cst_28 : f32 to vector<1x1xf32>
      %67 = arith.subf %66, %65 : vector<1x1xf32>
      %cst_29 = arith.constant 5.000000e-01 : f32
      %68 = vector.broadcast %cst_29 : f32 to vector<1x1xf32>
      %69 = arith.mulf %68, %67 : vector<1x1xf32>
      %cst_30 = arith.constant 3.000000e-01 : f32
      %70 = vector.broadcast %cst_30 : f32 to vector<1x1xf32>
      %71 = arith.subf %69, %70 : vector<1x1xf32>
      %cst_31 = arith.constant 0.000000e+00 : f32
      %72 = vector.broadcast %cst_31 : f32 to vector<1x1xf32>
      %73 = arith.cmpf ogt, %71, %72 : vector<1x1xf32>
      %74 = arith.mulf %71, %71 : vector<1x1xf32>
      %cst_32 = arith.constant 0.000000e+00 : f32
      %75 = vector.broadcast %cst_32 : f32 to vector<1x1xf32>
      %76 = arith.select %73, %74, %75 : vector<1x1xi1>, vector<1x1xf32>
      %77 = vector.broadcast %62 : f32 to vector<1x1xf32>
      %cst_33 = arith.constant 1.000000e+00 : f32
      %78 = vector.broadcast %cst_33 : f32 to vector<1x1xf32>
      %79 = arith.mulf %78, %76 : vector<1x1xf32>
      %80 = arith.addf %77, %79 : vector<1x1xf32>
      %c0_34 = arith.constant 0 : index
      %c0_35 = arith.constant 0 : index
      %81 = vector.load %arg6[%c0_34, %c0_35] : memref<1x1xf32, #tpu.memory_space<vmem>>, vector<1x1xf32>
      tpu.vector_store %arg6[%c0_34, %c0_35], %80 {strides = array<i32>} : memref<1x1xf32, #tpu.memory_space<vmem>>, vector<1x1xf32>,
    } else {
    }
    return
  }
  func.func @transform_0(%arg0: i32, %arg1: i32) -> (i32, i32) {
    %c0_i32 = arith.constant 0 : i32
    return %arg0, %arg1 : i32, i32
  }
  func.func @transform_1(%arg0: i32, %arg1: i32) -> (i32, i32) {
    %c0_i32 = arith.constant 0 : i32
    return %arg0, %arg1 : i32, i32
  }
  func.func @transform_2(%arg0: i32, %arg1: i32) -> (i32, i32) {
    %c0_i32 = arith.constant 0 : i32
    %c0_i32_0 = arith.constant 0 : i32
    %c0_i32_1 = arith.constant 0 : i32
    return %c0_i32, %c0_i32_0 : i32, i32
  }
  func.func @transform_3(%arg0: i32, %arg1: i32) -> (i32, i32) {
    %c0_i32 = arith.constant 0 : i32
    %c0_i32_0 = arith.constant 0 : i32
    %c0_i32_1 = arith.constant 0 : i32
    return %c0_i32, %c0_i32_0 : i32, i32
  }
  func.func @transform_4(%arg0: i32, %arg1: i32) -> (i32, i32) {
    %c0_i32 = arith.constant 0 : i32
    %c0_i32_0 = arith.constant 0 : i32
    %c0_i32_1 = arith.constant 0 : i32
    return %c0_i32, %c0_i32_0 : i32, i32
  }
}

</mosaic_0001>

<bundles_post_ra>
// kernel: tpu_custom_call.1
= control target key start
LH: loop header
LB: loop body
LE: loop exit
PB: predicated region body
PF: predicated region fallthrough
CT: control target
= control target key end

     0   :  { %9 = vsyncpa [#allocation9], 0  ;;  %s1077_s0 = inlined_call_operand.hbm [shape: f32[16,1536], index: 0, kind: input, shape index: {}]   ;;  %s1078_s1 = inlined_call_operand.hbm [shape: f32[16,1536], index: 1, kind: input, shape index: {}]   ;;  %s1079_s2 = inlined_call_operand.vmem [shape: f32[4,128], index: 2, kind: input, shape index: {}]   ;;  %s1080_s3 = inlined_call_operand.vmem [shape: f32[4,128], index: 3, kind: input, shape index: {}]   ;;  %s1081_s4 = inlined_call_operand.hbm [shape: f32[1,1], index: 4, kind: output, shape index: {}]  }
   0x1   :  { %11 = vsyncpa [#allocation9 + $0x1], 0 }
   0x2   :  { %12 = vsyncpa [#allocation12], 0 }
   0x3   :  { %14 = vsyncpa [#allocation12 + $0x1], 0 }
   0x4   :  { %15 = vsyncpa [#allocation10], 0  ;;  %s837_s15 = smov 0   ;;  %s839_s16 = smov 0  }
   0x5   :  { %s841_s17 = smov 0   ;;  %s843_s18 = smov 0  }
   0x6   :  { %s845_s19 = smov 0   ;;  %s847_s20 = smov 0  }
   0x7   :  { %s849_s21 = smov 0   ;;  %s851_s22 = smov 0  }
   0x8 LB: > { %s1082_s23 = sadd.s32 4294967295, %s806_s22   ;;  %s30_s24 = sadd.s32 1, %s798_s20  ;;  %s806_s22 = sphi %s851_s22, %s21_s22   ;;  %s802_s21 = sphi %s849_s21, %s1099_s21   ;;  %s798_s20 = sphi %s847_s20, %s1098_s20   ;;  %s794_s19 = sphi %s845_s19, %s1097_s19   ;;  %s790_s18 = sphi %s843_s18, %s1096_s18   ;;  %s786_s17 = sphi %s841_s17, %s1095_s17   ;;  %s782_s16 = sphi %s839_s16, %s1094_s16   ;;  %s778_s15 = sphi %s837_s15, %s1093_s15  }
   0x9   : > { %p31_p0 = scmp.ge.s32.totalorder %s30_s24, 3  ;;  %s33_s25 = sadd.s32 1, %s802_s21 }
   0xa   : > { %s42_s26 = sadd.s32 1, %s786_s17  ;;  %p49_p1 = scmp.ne.s32.totalorder %s786_s17, %s782_s16 }
   0xb   : > { %s1101_s24 = smov (%p31_p0, %s30_s24), 0  ;;  %s1103_s25 = smov (!%p31_p0, %s33_s25), %s802_s21 }
   0xc   : > { %s38_s27 = ssub.s32 %s798_s20, %s1101_s24  ;;  %p50_p2 = scmp.eq.s32.totalorder %s806_s22, 0 }
   0xd   : > { %p35_p3 = scmp.ge.s32.totalorder %s1103_s25, 2  ;;  %p55_p4 = scmp.ne.s32.totalorder %s782_s16, %s778_s15 }
   0xe   : > { %p888_p5 = por %p50_p2, %p49_p1  ;;  %p56_p6 = scmp.eq.s32.totalorder %s1082_s23, 0 }
   0xf   : > { %s1105_s25 = smov (%p35_p3, %s1103_s25), 0  ;;  %p573_p8 = scmp.lt.s32.totalorder %s806_s22, 6 }
  0x10   : > { %p896_p7 = por %p56_p6, %p55_p4  ;;  %s37_s30 = ssub.s32 %s802_s21, %s1105_s25 }
  0x11   : > { %s39_s5 = sor.u32 %s38_s27, %s37_s30  ;;  %s904_s6 = sand.u32 1, %s786_s17  }
  0x12   : > { %s1085_s29 = scalar_select %p896_p7, 1, 0 }
  0x13   : > { %p40_p9 = scmp.eq.s32.totalorder %s39_s5, 0  ;;  %s534_s7 = sshll.u32 %s904_s6, 5 }
  0x14   : > { %s535_s8 = sshll.u32 %s798_s20, 2  ;;  %s552_s10 = smul.u32 12, %s802_s21 }
  0x15   : > { %s909_s9 = scalar_select %p40_p9, %s786_s17, %s42_s26  }
  0x16   : > { %s180_s11 = scalar_lea.vmem [#allocation8], %s534_s7  ;;  %p916_p10 = pnand %p573_p8, %p888_p5 }
  0x17   : > { %s190_s12 = sshll.u32 %s180_s11, 4  ;;  %s920_s14 = sadd.s32 %s552_s10, %s535_s8  ;;  %s922_s12 = int_to_ptr.vmem [resolvable:$true] %s190_s12 }
  0x18   : > { %s536_s15 = sshll.u32 %s920_s14, 7  ;;  %s177_s28 = scalar_lea.sflag [#allocation9], %s904_s6 }
  0x19   : > { %s930_s30 = scalar_lea.hbm %s1077_s0, %s536_s15  ;;  %p648_p13 = pneg %p916_p10 }
  0x1a   : > { %s646_s5 = scalar_lea.hbm %s930_s30, 512  ;;  %s651_s11 = scalar_lea.hbm %s1077_s0, 3072 }
  0x1b   : > { %p647_p12 = scmp.ne.s32.totalorder %s930_s30, %s646_s5  ;;  %p652_p2 = scmp.lt.u32.totalorder %s930_s30, %s1077_s0 }
  0x1c   : > { %p653_p3 = scmp.lt.u32.totalorder %s651_s11, %s646_s5  ;;  %p655_p5 = scmp.lt.u32.totalorder %s646_s5, %s930_s30 }
  0x1d   : > { %p649_p0 = pnand %p648_p13, %p647_p12 }
  0x1e   : > { %p654_p4 = por %p653_p3, %p652_p2 }
  0x1f   : > { %p650_p1 = pneg %p649_p0 }
  0x20   : > { %p656_p6 = por %p655_p5, %p654_p4 }
  0x22   : > { %p657_p8 = pnand %p656_p6, %p650_p1 }
  0x24   : > { %660 = shalt.err (!%p657_p8)
}
  0x25   : > { %s661_s23 = scalar_lea.vmem %s922_s12, 512  ;;  %s808_s8 = smov [#allocation8]  }
  0x26   : > { %p662_p9 = scmp.ne.s32.totalorder %s922_s12, %s661_s23  ;;  %s666_s10 = sshll.u32 %s808_s8, 4  ;;  %s667_s10 = int_to_ptr.vmem [resolvable:$false] %s666_s10 }
  0x27   : > { %s668_s26 = scalar_lea.vmem %s667_s10, 1024  ;;  %p669_p11 = scmp.lt.s32.totalorder %s922_s12, %s667_s10 }
  0x28   : > { %p664_p12 = pnand %p662_p9, %p648_p13  ;;  %p670_p2 = scmp.lt.s32.totalorder %s668_s26, %s661_s23 }
  0x2a   : > { %p665_p0 = pneg %p664_p12  ;;  %p671_p3 = por %p670_p2, %p669_p11 }
  0x2c   : > { %p672_p4 = pnand %p671_p3, %p665_p0 }
  0x2e   : > { %675 = shalt.err (!%p672_p4)
}
  0x2f   : > { %569 = dma.hbm_to_vmem [thread:$0]  (!%p916_p10), %s930_s30, 512, %s922_s12, %s177_s28  }
  0x30   : > { %p216_p1 = scmp.lt.s32.totalorder %s806_s22, 7  ;;  %s965_s23 = scalar_lea.hbm %s1078_s1, %s536_s15 }
  0x31   : > { %p1087_p11 = scmp.ge.s32.totalorder %s806_s22, 1  ;;  %s201_s8 = scalar_lea.vmem [#allocation11], %s534_s7 }
  0x32   : > { %s211_s10 = sshll.u32 %s201_s8, 4  ;;  %s198_s12 = scalar_lea.sflag [#allocation12], %s904_s6  ;;  %s212_s10 = int_to_ptr.vmem [resolvable:$true] %s211_s10 }
  0x33   : > { %p969_p5 = pnand %p1087_p11, %p216_p1  ;;  %s676_s14 = scalar_lea.hbm %s965_s23, 512 }
  0x34   : > { %p677_p6 = scmp.ne.s32.totalorder %s965_s23, %s676_s14  ;;  %s681_s28 = scalar_lea.hbm %s1078_s1, 3072 }
  0x35   : > { %s1088_s27 = scalar_select %p969_p5, 1, 0 }
  0x36   : > { %p679_p8 = pnand %p677_p6, %p648_p13  ;;  %p682_p12 = scmp.lt.u32.totalorder %s965_s23, %s1078_s1 }
  0x37   : > { %p683_p0 = scmp.lt.u32.totalorder %s681_s28, %s676_s14  ;;  %p685_p3 = scmp.lt.u32.totalorder %s676_s14, %s965_s23 }
  0x38   : > { %p680_p9 = pneg %p679_p8 }
  0x39   : > { %p684_p2 = por %p683_p0, %p682_p12 }
  0x3b   : > { %p686_p4 = por %p685_p3, %p684_p2 }
  0x3d   : > { %p687_p1 = pnand %p686_p4, %p680_p9 }
  0x3f   : > { %690 = shalt.err (!%p687_p1)
}
  0x40   : > { %s691_s6 = scalar_lea.vmem %s212_s10, 512  ;;  %s809_s7 = smov [#allocation11]  }
  0x41   : > { %p692_p11 = scmp.ne.s32.totalorder %s212_s10, %s691_s6  ;;  %s696_s11 = sshll.u32 %s809_s7, 4  ;;  %s697_s11 = int_to_ptr.vmem [resolvable:$false] %s696_s11 }
  0x42   : > { %s698_s8 = scalar_lea.vmem %s697_s11, 1024  ;;  %p699_p7 = scmp.lt.s32.totalorder %s212_s10, %s697_s11 }
  0x43   : > { %p694_p6 = pnand %p692_p11, %p648_p13  ;;  %p700_p5 = scmp.lt.s32.totalorder %s698_s8, %s691_s6 }
  0x45   : > { %p695_p8 = pneg %p694_p6  ;;  %p701_p0 = por %p700_p5, %p699_p7 }
  0x47   : > { %p702_p12 = pnand %p701_p0, %p695_p8 }
  0x49   : > { %705 = shalt.err (!%p702_p12)
}
  0x4a   : > { %572 = dma.hbm_to_vmem [thread:$0]  (!%p916_p10), %s965_s23, 512, %s212_s10, %s198_s12  }
  0x4b   : > { %p1089_p9 = scmp.ne.s32.totalorder %s1088_s27, 0 }
  0x4c   : > { %s222_s14 = sand.u32 (!%p1089_p9), 1, %s782_s16   ;;  %p1090_p13 = scmp.ne.s32.totalorder (!%p1089_p9), %s1085_s29, 0 }
  0x4d   : > { %220 = sbr.rel (%p1089_p9) target bundleno = 625 (0x271), region = 36  ;;  %s541_s15 = sshll.u32 (!%p1089_p9), %s222_s14, 5 }
  0x4e   : > { %s223_s30 = scalar_lea.sflag (!%p1089_p9), [#allocation9], %s222_s14  ;;  %s226_s28 = scalar_lea.vmem (!%p1089_p9), [#allocation8], %s541_s15 }
  0x54   : > { %765 = dma.done.wait (%p1090_p13), %s223_s30, 512  }
  0x55   : > { %767 = vsyncadd (%p1090_p13), %s223_s30, 4294966784  ;;  %s232_s26 = scalar_lea.sflag [#allocation12], %s222_s14  ;;  %s235_s5 = scalar_lea.vmem [#allocation11], %s541_s15 }
  0x56   : > { %769 = dma.done.wait (%p1090_p13), %s232_s26, 512  }
  0x57   : > { %771 = vsyncadd (%p1090_p13), %s232_s26, 4294966784  ;;  %p262_p7 = scmp.eq.s32.totalorder %s794_s19, 0  ;;  %p263_p10 = scmp.eq.s32.totalorder %s790_s18, 0 }
  0x59   : > { %p264_p5 = pnand %p263_p10, %p262_p7 }
  0x5a   : > { %vm268_vm0 = vcmask (!%p264_p5), 0   ;;  %v810_v0 = vmov (!%p264_p5), 0.0  }
  0x5b   : > { %267 = sbr.rel (%p264_p5) target bundleno = 98 (0x62), region = 48  ;;  %269 = vst.msk [vmem:[#allocation7] sm:$0x1] (!%p264_p5), %vm268_vm0, %v810_v0 }
  0x62 PF: > { %v270_v1 = vld [vmem:[%s226_s28] sm:$0xff]  ;;  %v275_v3 = vld [vmem:[%s226_s28 + $0x8] sm:$0xff]  ;;  %v285_v9 = vld [vmem:[%s226_s28 + $0x10] sm:$0xff]  ;;  %p543_p2 = scmp.ne.s32.totalorder %s790_s18, 0 }
  0x63   : > { %v271_v2 = vld [vmem:[%s235_s5] sm:$0xff]  ;;  %v272_v4 = vmul.f32 %v270_v1, %v270_v1  ;;  %v276_v7 = vld [vmem:[%s235_s5 + $0x8] sm:$0xff]  ;;  %v277_v8 = vadd.f32 %v275_v3, %v270_v1  ;;  %v286_v10 = vld [vmem:[%s235_s5 + $0x10] sm:$0xff]  ;;  %v279_v12 = vmul.f32 %v275_v3, %v275_v3  ;;  %v289_v18 = vmul.f32 %v285_v9, %v285_v9 }
  0x64   : > { %v273_v5 = vmul.f32 %v271_v2, %v271_v2  ;;  %v274_v6 = vmul.f32 %v271_v2, %v270_v1  ;;  %v278_v11 = vadd.f32 %v276_v7, %v271_v2  ;;  %v281_v13 = vmul.f32 %v276_v7, %v276_v7  ;;  %v295_v15 = vld [vmem:[%s226_s28 + $0x18] sm:$0xff] }
  0x65   : > { %v283_v14 = vmul.f32 %v276_v7, %v275_v3  ;;  %v296_v16 = vld [vmem:[%s235_s5 + $0x18] sm:$0xff]  ;;  %v287_v17 = vadd.f32 %v285_v9, %v277_v8  ;;  %v291_v19 = vmul.f32 %v286_v10, %v286_v10  ;;  %v293_v20 = vmul.f32 %v286_v10, %v285_v9  ;;  %307 = sbr.rel (%p543_p2) target bundleno = 110 (0x6e), region = 52 }
  0x66   : > { %v280_v21 = vadd.f32 %v279_v12, %v272_v4  ;;  %v282_v22 = vadd.f32 %v281_v13, %v273_v5  ;;  %v288_v24 = vadd.f32 %v286_v10, %v278_v11  ;;  %v299_v26 = vmul.f32 %v295_v15, %v295_v15 }
  0x67   : > { %v284_v23 = vadd.f32 %v283_v14, %v274_v6  ;;  %v297_v25 = vadd.f32 %v295_v15, %v287_v17  ;;  %v301_v27 = vmul.f32 %v296_v16, %v296_v16  ;;  %v303_v28 = vmul.f32 %v296_v16, %v295_v15 }
  0x68   : > { %v290_v29 = vadd.f32 %v289_v18, %v280_v21  ;;  %v292_v30 = vadd.f32 %v291_v19, %v282_v22  ;;  %v298_v32 = vadd.f32 %v296_v16, %v288_v24 }
  0x69   : > { %v294_v31 = vadd.f32 %v293_v20, %v284_v23  ;;  %308 = vst [vmem:[#allocation2] sm:$0xff] (!%p543_p2), %v297_v25 }
  0x6a   : > { %v300_v33 = vadd.f32 %v299_v26, %v290_v29  ;;  %v302_v34 = vadd.f32 %v301_v27, %v292_v30  ;;  %309 = vst [vmem:[#allocation3] sm:$0xff] (!%p543_p2), %v298_v32 }
  0x6b   : > { %v304_v35 = vadd.f32 %v303_v28, %v294_v31 }
  0x6c   : > { %310 = vst [vmem:[#allocation4] sm:$0xff] %v300_v33  ;;  %311 = vst [vmem:[#allocation5] sm:$0xff] %v302_v34 }
  0x6d   : > { %312 = vst [vmem:[#allocation6] sm:$0xff] %v304_v35 }
  0x6e PF: > { %316 = sbr.rel (%p263_p10) target bundleno = 121 (0x79), region = 56 }
  0x72   : > { %v317_v36 = vld [vmem:[#allocation2] sm:$0xff] (!%p263_p10) }
  0x73   : > { %v320_v37 = vld [vmem:[#allocation3] sm:$0xff] (!%p263_p10)  ;;  %v318_v39 = vadd.f32 (!%p263_p10), %v317_v36, %v297_v25 }
  0x74   : > { %v321_v40 = vadd.f32 (!%p263_p10), %v320_v37, %v298_v32  ;;  %v329_v43 = vld [vmem:[#allocation6] sm:$0xff] (!%p263_p10) }
  0x75   : > { %v323_v38 = vld [vmem:[#allocation4] sm:$0xff]  ;;  %v326_v42 = vld [vmem:[#allocation5] sm:$0xff]  ;;  %v330_v45 = vadd.f32 %v329_v43, %v304_v35  ;;  %319 = vst [vmem:[#allocation2] sm:$0xff] %v318_v39 }
  0x76   : > { %v324_v41 = vadd.f32 %v323_v38, %v300_v33  ;;  %v327_v44 = vadd.f32 %v326_v42, %v302_v34  ;;  %322 = vst [vmem:[#allocation3] sm:$0xff] %v321_v40 }
  0x77   : > { %331 = vst [vmem:[#allocation6] sm:$0xff] %v330_v45 }
  0x78   : > { %325 = vst [vmem:[#allocation4] sm:$0xff] %v324_v41  ;;  %328 = vst [vmem:[#allocation5] sm:$0xff] %v327_v44 }
  0x79 PF: > { %p332_p3 = scmp.eq.s32.totalorder %s790_s18, 2  ;;  %p545_p4 = scmp.ne.s32.totalorder %s790_s18, 2 }
  0x7a   : > { %v376_v8 = vlaneseq (!%p545_p4)  ;;  %s546_s29 = sshll.u32 (!%p545_p4), %s794_s19, 3  ;;  %v382_v26 = vld [vmem:[#allocation7] sm:$0x1] (!%p545_p4)  ;;  %vm390_vm2 = vcmask (!%p545_p4), 0  }
  0x7b   : > { %335 = sbr.rel (%p545_p4) target bundleno = 316 (0x13c), region = 60  ;;  %v378_v13 = vstv (!%p545_p4), %s546_s29 }
  0x7c   : > { %v377_v11 = vshrl.u32 (!%p545_p4), %v376_v8, 7 }
  0x7d   : > { %v340_v48 = vld [vmem:[#allocation3] sm:$0xff] (!%p545_p4) }
  0x7e   : > { %v352_v50 = vld [vmem:[#allocation6] sm:$0xff] (!%p545_p4)  ;;  %v379_v15 = vadd.s32 (!%p545_p4), %v378_v13, %v377_v11 }
  0x7f   : > { %v344_v47 = vld [vmem:[#allocation4] sm:$0xff] (!%p545_p4)  ;;  %v348_v49 = vld [vmem:[#allocation5] sm:$0xff] (!%p545_p4) }
  0x80   : > { %v336_v46 = vld [vmem:[#allocation2] sm:$0xff] (!%p545_p4)  ;;  %345 = vadd.xlane.f32.xlu1 (!%p545_p4), %v344_v47  ;;  %vm380_vm1 = vcmp.lt.s32.totalorder (!%p545_p4), %v379_v15, 12 }
  0x81   : > { %337 = vadd.xlane.f32.xlu0 (!%p545_p4), %v336_v46 }
  0x84   : > { %349 = vadd.xlane.f32.xlu1 %v348_v49 }
  0x85   : > { %341 = vadd.xlane.f32.xlu0 %v340_v48 }
  0x89   : > { %353 = vadd.xlane.f32.xlu0 %v352_v50 }
 0x10d   : > { %v346_v52 = vpop.xlane.xlu1 %345 }
 0x10e   : > { %v338_v51 = vpop.xlane.xlu0 %337  ;;  %v347_v56 = vmul.f32 0.0006510417, %v346_v52 }
 0x10f   : > { %v339_v53 = vmul.f32 0.0006510417, %v338_v51 }
 0x111   : > { %v350_v55 = vpop.xlane.xlu1 %349  ;;  %v356_v57 = vmul.f32 %v339_v53, %v339_v53  ;;  %v362_v9 = vmul.f32 2.0, %v339_v53 }
 0x112   : > { %v342_v54 = vpop.xlane.xlu0 %341  ;;  %v351_v59 = vmul.f32 0.0006510417, %v350_v55 }
 0x113   : > { %v343_v58 = vmul.f32 0.0006510417, %v342_v54  ;;  %v357_v62 = vsub.f32 %v347_v56, %v356_v57 }
 0x115   : > { %v358_v60 = vmul.f32 %v343_v58, %v343_v58  ;;  %v360_v3 = vmul.f32 %v343_v58, %v339_v53  ;;  %v363_v12 = vmul.f32 %v362_v9, %v343_v58 }
 0x116   : > { %v354_v61 = vpop.xlane.xlu0 %353 }
 0x117   : > { %v359_v63 = vsub.f32 %v351_v59, %v358_v60  ;;  %v368_v0 = vadd.f32 %v358_v60, %v356_v57  ;;  %v355_v1 = vmul.f32 0.0006510417, %v354_v61  ;;  %v364_v16 = vadd.f32 0.0001, %v363_v12 }
 0x119   : > { %v370_v2 = vadd.f32 %v359_v63, %v357_v62  ;;  %v369_v4 = vadd.f32 0.0001, %v368_v0  ;;  %v361_v6 = vsub.f32 %v355_v1, %v360_v3 }
 0x11b   : > { %v371_v5 = vadd.f32 0.0009, %v370_v2  ;;  %v365_v10 = vmul.f32 2.0, %v361_v6 }
 0x11d   : > { %v372_v7 = vmul.f32 %v371_v5, %v369_v4  ;;  %v366_v14 = vadd.f32 0.0009, %v365_v10 }
 0x11f   : > { %642 = vrcp.f32 %v372_v7  ;;  %v367_v17 = vmul.f32 %v366_v14, %v364_v16 }
 0x129   : > { %v643_v18 = vpop.eup %642 }
 0x12a   : > { %v374_v19 = vmul.f32 %v643_v18, %v367_v17 }
 0x12c   : > { %v381_v20 = vsel %vm380_vm1, %v374_v19, 0.0 }
 0x12d   : > { %v383_v21 = vrot.slane %v381_v20, 4 }
 0x12f   : > { %v384_v22 = vadd.f32 %v383_v21, %v381_v20 }
 0x131   : > { %v385_v23 = vrot.slane %v384_v22, 2 }
 0x133   : > { %v386_v24 = vadd.f32 %v385_v23, %v384_v22 }
 0x135   : > { %v387_v25 = vrot.slane %v386_v24, 1 }
 0x137   : > { %v388_v27 = vadd.f32 %v387_v25, %v386_v24 }
 0x139   : > { %v389_v28 = vadd.f32 %v388_v27, %v382_v26 }
 0x13b   : > { %391 = vst.msk [vmem:[#allocation7] sm:$0x1] %vm390_vm2, %v389_v28 }
 0x13c PF: > { %p392_p1 = scmp.eq.s32.totalorder %s794_s19, 1 }
 0x13e   : > { %p393_p11 = pnand %p392_p1, %p332_p3 }
 0x13f   : > { %v397_v29 = vld [vmem:[%s1079_s2] sm:$0xf] (!%p393_p11)  ;;  %vm401_vm3 = vcmask (!%p393_p11), 1043456   ;;  %vm431_vm7 = vcmask (!%p393_p11), 0  }
 0x140   : > { %396 = sbr.rel (%p393_p11) target bundleno = 600 (0x258), region = 64  ;;  %v398_v30 = vld [vmem:[%s1080_s3] sm:$0xf] (!%p393_p11) }
 0x141   : > { %v399_v31 = vsub.f32 (!%p393_p11), %v397_v29, %v398_v30 }
 0x142   : > { %v421_v47 = vld [vmem:[#allocation7] sm:$0x1] (!%p393_p11) }
 0x143   : > { %v400_v32 = vmul.f32 (!%p393_p11), %v399_v31, %v399_v31  ;;  %v422_v48 = vmul.f32 (!%p393_p11), 0.083333336, %v421_v47 }
 0x145   : > { %v402_v33 = vsel (!%p393_p11), %vm401_vm3, %v400_v32, 0.0  ;;  %v423_v49 = vsub.f32 (!%p393_p11), 1.0, %v422_v48 }
 0x146   : > { %403 = vadd.xlane.f32.xlu0 (!%p393_p11), %v402_v33 }
 0x147   : > { %v424_v50 = vmul.f32 0.5, %v423_v49 }
 0x149   : > { %v547_v51 = vadd.f32 -0.3, %v424_v50 }
 0x14b   : > { %v427_v52 = vmul.f32 %v547_v51, %v547_v51  ;;  %vm426_vm6 = vcmp.gt.f32.partialorder %v547_v51, 0.0 }
 0x14d   : > { %v428_v53 = vsel %vm426_vm6, %v427_v52, 0.0 }
 0x1d3   : > { %v404_v34 = vpop.xlane.xlu0 %403 }
 0x1d4   : > { %v405_v35 = vrot.slane %v404_v34, 4 }
 0x1d6   : > { %v406_v36 = vadd.f32 %v405_v35, %v404_v34 }
 0x1d8   : > { %v407_v37 = vrot.slane %v406_v36, 2 }
 0x1da   : > { %v408_v38 = vadd.f32 %v407_v37, %v406_v36 }
 0x1dc   : > { %v409_v39 = vrot.slane %v408_v38, 1 }
 0x1de   : > { %v410_v40 = vadd.f32 %v409_v39, %v408_v38 }
 0x1e0   : > { %554 = vpush %v410_v40 }
 0x211   : > { %s555_s18 = spop %554 }
 0x212   : > { %v412_v41 = vstv %s555_s18 }
 0x213   : > { %644 = vrsqrt.f32 %v412_v41  ;;  %vm415_vm4 = vcmp.eq.f32.partialorder %v412_v41, inf  ;;  %v418_v44 = vand.u32 2147483648, %v412_v41  ;;  %vm417_vm5 = vcmp.eq.f32.partialorder %v412_v41, 0.0 }
 0x21d   : > { %v645_v42 = vpop.eup %644 }
 0x21e   : > { %v414_v43 = vmul.f32 %v645_v42, %v412_v41 }
 0x220   : > { %v416_v45 = vsel %vm415_vm4, %v412_v41, %v414_v43 }
 0x221   : > { %v419_v46 = vsel %vm417_vm5, %v418_v44, %v416_v45 }
 0x222   : > { %556 = vpush %v419_v46 }
 0x253   : > { %s557_s19 = spop %556 }
 0x254   : > { %v429_v54 = vstv %s557_s19 }
 0x255   : > { %v430_v55 = vadd.f32 %v429_v54, %v428_v53 }
 0x257   : > { %432 = vst.msk [vmem:[#allocation13] sm:$0x1] %vm431_vm7, %v430_v55 }
 0x258 PF: > { %s1091_s12 = sadd.s32 4294967295, %s806_s22   ;;  %s811_s7 = smov [#allocation13]  }
 0x259   : > { %p1027_p6 = scmp.eq.s32.totalorder %s1091_s12, 5  ;;  %s440_s11 = sshll.u32 %s811_s7, 4  ;;  %s441_s11 = int_to_ptr.vmem [resolvable:$true] %s440_s11 }
 0x25a   : > { %s706_s8 = scalar_lea.vmem %s441_s11, 16  ;;  %s712_s14 = scalar_lea.vmem %s441_s11, 32 }
 0x25b   : > { %p707_p8 = scmp.ne.s32.totalorder %s441_s11, %s706_s8  ;;  %p713_p9 = scmp.lt.s32.totalorder %s441_s11, %s441_s11 }
 0x25c   : > { %p714_p13 = scmp.lt.s32.totalorder %s712_s14, %s706_s8 }
 0x25d   : > { %p708_p0 = pnand %p707_p8, %p1027_p6 }
 0x25e   : > { %p715_p7 = por %p714_p13, %p713_p9 }
 0x25f   : > { %p709_p12 = pneg %p708_p0 }
 0x261   : > { %p716_p10 = pnand %p715_p7, %p709_p12 }
 0x263   : > { %719 = shalt.err (!%p716_p10)
}
 0x264   : > { %s720_s28 = scalar_lea.hbm %s1081_s4, 16 }
 0x265   : > { %p721_p5 = scmp.ne.s32.totalorder %s1081_s4, %s720_s28  ;;  %p726_p4 = scmp.lt.u32.totalorder %s720_s28, %s1081_s4 }
 0x267   : > { %p722_p2 = pnand %p721_p5, %p1027_p6 }
 0x269   : > { %p723_p3 = pneg %p722_p2 }
 0x26b   : > { %p728_p1 = pnand %p726_p4, %p723_p3 }
 0x26d   : > { %731 = shalt.err (!%p728_p1)
}
 0x26e   : > { %563 = dma.vmem_to_hbm [thread:$0]  (%p1027_p6), %s441_s11, 16, %s1081_s4, [#allocation10]  }
 0x26f   : > { %773 = dma.done.wait (%p1027_p6), [#allocation10], 16  }
 0x270   : > { %775 = vsyncadd (%p1027_p6), [#allocation10], 4294967280 }
 0x271 PF: > { %s21_s22 = sadd.s32 1, %s806_s22   ;;  %s1093_s15 = smov %s782_s16 }
 0x272   : > { %p18_p11 = scmp.ge.s32.totalorder %s21_s22, 8   ;;  %s1094_s16 = smov %s786_s17 }
 0x273   : > { %s1095_s17 = smov %s909_s9  ;;  %s1096_s18 = smov %s798_s20 }
 0x274   : > { %s1097_s19 = smov %s802_s21  ;;  %s1098_s20 = smov %s1101_s24 }
 0x275   : > { %s1099_s21 = smov %s1105_s25  ;;  %20 = sbr.rel (!%p18_p11) target bundleno = 8 (0x8), region = 106 }
 0x27c   :  { %453 = vsyncpa [#allocation9], 1 }
 0x27d   :  { %455 = vsyncpa [#allocation9 + $0x1], 1 }
 0x27e   :  { %456 = vsyncpa [#allocation12], 1 }
 0x27f   :  { %458 = vsyncpa [#allocation12 + $0x1], 1 }
 0x280   :  { %459 = vsyncpa [#allocation10], 1 }
 0x281   :  { %461 = vsyncpa [#allocation10 + $0x1], 1 }

</bundles_post_ra>
